<compile_context>
chip_gen: v7x
topology: tpu7x:2x2x1
jax: 0.10.0
libtpu: 0.0.40
codegen_flags: <defaults>
</compile_context>

<pallas_src>
import jax
import jax.numpy as jnp
from jax import lax
from jax.experimental import pallas as pl
from jax.experimental.pallas import tpu as pltpu


def _round_up(n, m):
    return ((n + m - 1) // m) * m


# ------------------------------ Pallas kernel ------------------------------ #
def _make_kernel(tp, w, num_steps):
    """tp: padded table rows (mult of 128), w: padded feature width (mult of 128)."""

    def kernel(step_ref, slab_ref, o_ref):
        # step_ref: (B, 1) int32 diffusion-step indices
        # slab_ref: (tp + 2w + 16, w) f32 packed params:
        #   [0, tp)          sinusoidal table (rows >= num_steps are zeros)
        #   [tp, tp+w)       projection1 weight, (in, out) layout
        #   [tp+w, tp+2w)    projection2 weight, (in, out) layout
        #   row tp+2w        projection1 bias
        #   row tp+2w+8      projection2 bias
        # o_ref:    (B, w) f32
        steps = jnp.clip(step_ref[...], 0, num_steps - 1)        # (B, 1)
        B = steps.shape[0]

        # Fused gather: one-hot rows against the table, done on the MXU.
        iota = lax.broadcasted_iota(jnp.int32, (B, tp), 1)
        onehot = jnp.where(iota == steps, 1.0, 0.0)              # (B, tp) f32

        table = slab_ref[0:tp, :]                                # (tp, w)
        w1 = slab_ref[tp:tp + w, :]                              # (w, w)
        w2 = slab_ref[tp + w:tp + 2 * w, :]                      # (w, w)
        b1 = slab_ref[tp + 2 * w:tp + 2 * w + 1, :]              # (1, w)
        b2 = slab_ref[tp + 2 * w + 8:tp + 2 * w + 9, :]          # (1, w)

        def silu(v):
            # Exact sigmoid via one EUP tanh; robust for any magnitude of v.
            return v * (0.5 * (jnp.tanh(0.5 * v) + 1.0))

        x = jnp.dot(onehot, table, preferred_element_type=jnp.float32)   # (B, w)
        h = silu(jnp.dot(x, w1, preferred_element_type=jnp.float32) + b1)
        y = silu(jnp.dot(h, w2, preferred_element_type=jnp.float32) + b2)
        o_ref[...] = y.astype(o_ref.dtype)

    return kernel


def diffusion_embedding_forward(diffusion_step, slab, *, num_steps, tp, w, p):
    """diffusion_step: (B,) integer indices -> (B, p) f32."""
    B = diffusion_step.shape[0]
    Bp = max(8, _round_up(B, 8))
    steps_i32 = diffusion_step.astype(jnp.int32)
    if Bp == B:
        steps_2d = steps_i32.reshape(B, 1)
    else:
        steps_2d = jnp.zeros((Bp, 1), jnp.int32).at[:B, 0].set(steps_i32)

    flops = 2 * Bp * (tp * w + 2 * w * w)
    transcendentals = 2 * Bp * w                       # one tanh per elem per layer
    bytes_accessed = int(steps_2d.size * 4 + slab.size * 4 + Bp * w * 4)

    vmem = pltpu.MemorySpace.VMEM
    out = pl.pallas_call(
        _make_kernel(tp, w, num_steps),
        out_shape=jax.ShapeDtypeStruct((Bp, w), jnp.float32),
        in_specs=[pl.BlockSpec(memory_space=vmem),
                  pl.BlockSpec(memory_space=vmem)],
        out_specs=pl.BlockSpec(memory_space=vmem),
        cost_estimate=pl.CostEstimate(
            flops=flops,
            transcendentals=transcendentals,
            bytes_accessed=bytes_accessed),
    )(steps_2d, slab)

    if Bp != B or w != p:
        out = out[:B, :p]
    return out


# --------------------------- Module (params + glue) ------------------------ #
def build_embedding_table(num_steps, half_dim):
    # mirrors DiffusionEmbedding._build_embedding
    steps = jnp.arange(num_steps, dtype=jnp.float32)[:, None]             # (T,1)
    freqs = 10.0 ** (jnp.arange(half_dim, dtype=jnp.float32)
                     / (half_dim - 1.0) * 4.0)[None, :]                   # (1,d)
    table = steps * freqs                                                 # (T,d)
    return jnp.concatenate([jnp.sin(table), jnp.cos(table)], axis=1)      # (T,2d)


def init_params(key, embedding_dim, projection_dim):
    # deterministic init matching nn.Linear default (U(-1/sqrt(fan_in), +)),
    # stored in PyTorch layout (out_features, in_features).
    k1, k2, k3, k4 = jax.random.split(key, 4)
    lim1 = 1.0 / jnp.sqrt(embedding_dim)
    lim2 = 1.0 / jnp.sqrt(projection_dim)
    w1 = jax.random.uniform(k1, (projection_dim, embedding_dim),
                            jnp.float32, -lim1, lim1)
    b1 = jax.random.uniform(k2, (projection_dim,), jnp.float32, -lim1, lim1)
    w2 = jax.random.uniform(k3, (projection_dim, projection_dim),
                            jnp.float32, -lim2, lim2)
    b2 = jax.random.uniform(k4, (projection_dim,), jnp.float32, -lim2, lim2)
    return w1, b1, w2, b2


def make_module(key, num_steps, embedding_dim=128, projection_dim=None):
    if projection_dim is None:
        projection_dim = embedding_dim
    E, P = embedding_dim, projection_dim
    table = build_embedding_table(num_steps, E // 2)                      # (T,E)
    w1, b1, w2, b2 = init_params(key, E, P)

    # One-time packing of all parameters into a single lane-dense f32 slab.
    # All section offsets are multiples of 8 (table/w1/w2 starts are multiples
    # of 128) so every in-kernel static slice is sublane-aligned.
    tp = _round_up(num_steps, 128)
    W = max(_round_up(E, 128), _round_up(P, 128))
    slab = jnp.zeros((tp + 2 * W + 16, W), jnp.float32)
    slab = slab.at[:num_steps, :E].set(table)          # table rows
    slab = slab.at[tp:tp + E, :P].set(w1.T)            # projection1 (in,out)
    slab = slab.at[tp + W:tp + W + P, :P].set(w2.T)    # projection2 (in,out)
    slab = slab.at[tp + 2 * W, :P].set(b1)             # bias1 (row)
    slab = slab.at[tp + 2 * W + 8, :P].set(b2)         # bias2 (row)

    return dict(num_steps=num_steps, E=E, P=P, tp=tp, W=W, slab=slab,
                table=table, w1=w1, b1=b1, w2=w2, b2=b2)


def apply_module(module, diffusion_step):
    """diffusion_step: (B,) int32 indices -> (B, projection_dim) f32.

    NOTE: B up to 128/256 is essentially free (same weight DMA, same MXU
    passes) — batch timesteps or fuse with the consumer to amortize launch
    latency, which dominates at small B.
    """
    return diffusion_embedding_forward(
        diffusion_step, module["slab"],
        num_steps=module["num_steps"],
        tp=module["tp"], w=module["W"], p=module["P"])


# -------------------------------- reference -------------------------------- #
def reference_forward(diffusion_step, embedding_table, w1, b1, w2, b2):
    x = jnp.take(embedding_table, diffusion_step, axis=0)
    x = x @ w1.T + b1
    x = x * jax.nn.sigmoid(x)
    x = x @ w2.T + b2
    x = x * jax.nn.sigmoid(x)
    return x


if __name__ == "__main__":
    num_steps = 50
    embedding_dim = 128
    projection_dim = 128
    B = 8

    key = jax.random.PRNGKey(0)
    k_params, k_steps = jax.random.split(key)

    module = make_module(k_params, num_steps, embedding_dim, projection_dim)
    diffusion_step = jax.random.randint(k_steps, (B,), 0, num_steps, jnp.int32)

    out = apply_module(module, diffusion_step)
    out = jax.block_until_ready(out)

    ref = reference_forward(diffusion_step, module["table"],
                            module["w1"], module["b1"],
                            module["w2"], module["b2"])
    assert out.shape == (B, projection_dim)
    # Exact sigmoid now used in-kernel; only MXU f32-accumulation rounding and
    # the tanh-vs-logistic formulation differ from the XLA reference.
    assert jnp.allclose(out, ref, atol=1e-4, rtol=1e-4), "mismatch vs reference"

    print("KERNEL_OK")
</pallas_src>

<mosaic_0001>
module attributes {stable_mosaic.version = 11 : i64} {
  func.func @kernel(%arg0: memref<8x1xi32, #tpu.memory_space<vmem>>, %arg1: memref<400x128xf32, #tpu.memory_space<vmem>>, %arg2: memref<8x128xf32, #tpu.memory_space<vmem>>) attributes {dimension_semantics = [], scalar_prefetch = 0 : i64, scratch_operands = 0 : i64, tpu.core_type = #tpu.core_type<tc>} {
    %c0 = arith.constant 0 : index
    %c0_0 = arith.constant 0 : index
    %0 = vector.load %arg0[%c0, %c0_0] : memref<8x1xi32, #tpu.memory_space<vmem>>, vector<8x1xi32>
    %c0_i32 = arith.constant 0 : i32
    %c49_i32 = arith.constant 49 : i32
    %1 = vector.broadcast %c0_i32 : i32 to vector<8x1xi32>
    %2 = arith.maxsi %1, %0 : vector<8x1xi32>
    %3 = vector.broadcast %c49_i32 : i32 to vector<8x1xi32>
    %4 = arith.minsi %3, %2 : vector<8x1xi32>
    %5 = tpu.iota {dimensions = array<i32: 1>} : vector<8x128xi32>
    %6 = vector.broadcast %4 : vector<8x1xi32> to vector<8x128xi32>
    %7 = arith.cmpi eq, %5, %6 : vector<8x128xi32>
    %cst = arith.constant 1.000000e+00 : f32
    %cst_1 = arith.constant 0.000000e+00 : f32
    %8 = vector.broadcast %cst : f32 to vector<8x128xf32>
    %9 = vector.broadcast %cst_1 : f32 to vector<8x128xf32>
    %10 = arith.select %7, %8, %9 : vector<8x128xi1>, vector<8x128xf32>
    %c0_2 = arith.constant 0 : index
    %c0_3 = arith.constant 0 : index
    %11 = vector.load %arg1[%c0_2, %c0_3] : memref<400x128xf32, #tpu.memory_space<vmem>>, vector<128x128xf32>
    %c128 = arith.constant 128 : index
    %c0_4 = arith.constant 0 : index
    %12 = vector.load %arg1[%c128, %c0_4] : memref<400x128xf32, #tpu.memory_space<vmem>>, vector<128x128xf32>
    %c256 = arith.constant 256 : index
    %c0_5 = arith.constant 0 : index
    %13 = vector.load %arg1[%c256, %c0_5] : memref<400x128xf32, #tpu.memory_space<vmem>>, vector<128x128xf32>
    %c384 = arith.constant 384 : index
    %c0_6 = arith.constant 0 : index
    %14 = vector.load %arg1[%c384, %c0_6] : memref<400x128xf32, #tpu.memory_space<vmem>>, vector<1x128xf32>
    %c392 = arith.constant 392 : index
    %c0_7 = arith.constant 0 : index
    %15 = vector.load %arg1[%c392, %c0_7] : memref<400x128xf32, #tpu.memory_space<vmem>>, vector<1x128xf32>
    %cst_8 = arith.constant dense<0.000000e+00> : vector<8x128xf32>
    %16 = tpu.matmul %10, %11, %cst_8 {dimension_numbers = #tpu.dot_dimension_numbers<[1], [0], [0], [1], [0, 0, 1, 1], [], []>} : vector<8x128xf32>, vector<128x128xf32>, vector<8x128xf32> -> vector<8x128xf32>
    %cst_9 = arith.constant dense<0.000000e+00> : vector<8x128xf32>
    %17 = tpu.matmul %16, %12, %cst_9 {dimension_numbers = #tpu.dot_dimension_numbers<[1], [0], [0], [1], [0, 0, 1, 1], [], []>} : vector<8x128xf32>, vector<128x128xf32>, vector<8x128xf32> -> vector<8x128xf32>
    %18 = vector.broadcast %14 : vector<1x128xf32> to vector<8x128xf32>
    %19 = arith.addf %17, %18 : vector<8x128xf32>
    %cst_10 = arith.constant 5.000000e-01 : f32
    %20 = vector.broadcast %cst_10 : f32 to vector<8x128xf32>
    %21 = arith.mulf %20, %19 : vector<8x128xf32>
    %22 = math.tanh %21 : vector<8x128xf32>
    %cst_11 = arith.constant 1.000000e+00 : f32
    %23 = vector.broadcast %cst_11 : f32 to vector<8x128xf32>
    %24 = arith.addf %22, %23 : vector<8x128xf32>
    %cst_12 = arith.constant 5.000000e-01 : f32
    %25 = vector.broadcast %cst_12 : f32 to vector<8x128xf32>
    %26 = arith.mulf %25, %24 : vector<8x128xf32>
    %27 = arith.mulf %19, %26 : vector<8x128xf32>
    %cst_13 = arith.constant dense<0.000000e+00> : vector<8x128xf32>
    %28 = tpu.matmul %27, %13, %cst_13 {dimension_numbers = #tpu.dot_dimension_numbers<[1], [0], [0], [1], [0, 0, 1, 1], [], []>} : vector<8x128xf32>, vector<128x128xf32>, vector<8x128xf32> -> vector<8x128xf32>
    %29 = vector.broadcast %15 : vector<1x128xf32> to vector<8x128xf32>
    %30 = arith.addf %28, %29 : vector<8x128xf32>
    %cst_14 = arith.constant 5.000000e-01 : f32
    %31 = vector.broadcast %cst_14 : f32 to vector<8x128xf32>
    %32 = arith.mulf %31, %30 : vector<8x128xf32>
    %33 = math.tanh %32 : vector<8x128xf32>
    %cst_15 = arith.constant 1.000000e+00 : f32
    %34 = vector.broadcast %cst_15 : f32 to vector<8x128xf32>
    %35 = arith.addf %33, %34 : vector<8x128xf32>
    %cst_16 = arith.constant 5.000000e-01 : f32
    %36 = vector.broadcast %cst_16 : f32 to vector<8x128xf32>
    %37 = arith.mulf %36, %35 : vector<8x128xf32>
    %38 = arith.mulf %30, %37 : vector<8x128xf32>
    %c0_17 = arith.constant 0 : index
    %c0_18 = arith.constant 0 : index
    %39 = vector.load %arg2[%c0_17, %c0_18] : memref<8x128xf32, #tpu.memory_space<vmem>>, vector<8x128xf32>
    tpu.vector_store %arg2[%c0_17, %c0_18], %38 {strides = array<i32>} : memref<8x128xf32, #tpu.memory_space<vmem>>, vector<8x128xf32>,
    return
  }
}

</mosaic_0001>

<bundles_post_ra>
// kernel: tpu_custom_call.1
= control target key start
LH: loop header
LB: loop body
LE: loop exit
PB: predicated region body
PF: predicated region fallthrough
CT: control target
= control target key end

     0   :  { %7 = vsyncpa [#allocation3], 0  ;;  %s706_s0 = inlined_call_operand.vmem [shape: s32[8,1], index: 0, kind: input, shape index: {}]   ;;  %s707_s1 = inlined_call_operand.hbm [shape: f32[400,128], index: 1, kind: input, shape index: {}]   ;;  %s708_s2 = inlined_call_operand.hbm [shape: f32[8,128], index: 2, kind: output, shape index: {}]  }
   0x1   :  { %8 = vsyncpa [#allocation4], 0  ;;  %s625_s9 = smov [#allocation2]   ;;  %s577_s13 = scalar_lea.hbm %s707_s1, 6400 }
   0x2   :  { %s16_s10 = sshll.u32 %s625_s9, 4  ;;  %p578_p0 = scmp.ne.s32.totalorder %s707_s1, %s577_s13  ;;  %s17_s10 = int_to_ptr.vmem [resolvable:$true] %s16_s10 }
   0x3   :  { %p581_p1 = scmp.lt.u32.totalorder %s577_s13, %s707_s1 }
   0x5   :  { %p583_p2 = pnand %p581_p1, %p578_p0 }
   0x7   :  { %586 = shalt.err (!%p583_p2)
}
   0x8   :  { %s587_s18 = scalar_lea.vmem %s17_s10, 6400  ;;  %p592_p4 = scmp.lt.s32.totalorder %s17_s10, %s17_s10 }
   0x9   :  { %p588_p3 = scmp.ne.s32.totalorder %s17_s10, %s587_s18  ;;  %p593_p5 = scmp.lt.s32.totalorder %s587_s18, %s587_s18 }
   0xb   :  { %p594_p6 = por %p593_p5, %p592_p4 }
   0xd   :  { %p595_p7 = pnand %p594_p6, %p588_p3 }
   0xf   :  { %598 = shalt.err (!%p595_p7)
}
  0x10   :  { %s626_s19 = smov 128   ;;  %s627_s20 = smov 8  }
  0x11   :  { %22 = dma.hbm_to_vmem [thread:$0]  %s707_s1, 6400, %s17_s10, [#allocation3], %s626_s19, %s626_s19, %s627_s20  }
  0x12   :  { %621 = dma.done.wait [#allocation3], 6400  }
  0x13   :  { %622 = vsyncadd [#allocation3], 4294960896  ;;  %v628_v0 = vmov 0   ;;  %v629_v1 = vmov 0.0|0.0   ;;  %v26_v2 = vld [vmem:[%s706_s0] sm:$0xff]  ;;  %v39_v4 = vld [vmem:[#allocation2 + $0x8] sm:$0xff]  ;;  %v31_v54 = vlaneseq }
  0x14   :  { %572 = vset.pattern.permute.xlu0 %v628_v0  ;;  %491 = vmatprep.subr.bf16.mxu0 %v629_v1  ;;  %v38_v3 = vld [vmem:[#allocation2] sm:$0xff]  ;;  %vm27_vm0 = vcmp.gt.s32.totalorder %v26_v2, 0  ;;  %v40_v6 = vld [vmem:[#allocation2 + $0x10] sm:$0xff]  ;;  %v41_v7 = vld [vmem:[#allocation2 + $0x18] sm:$0xff]  ;;  %vm630_vm2 = vmmov 0   ;;  %v631_v13 = vmov 0.0  }
  0x15   :  { %515 = vmatprep.subr.bf16.mxu1 %v629_v1  ;;  %v492_v5 = vpack.c.bf16 %v39_v4, %v38_v3  ;;  %v28_v8 = vsel %vm27_vm0, %v26_v2, 0  ;;  %v495_v9 = vpack.c.bf16 %v41_v7, %v40_v6  ;;  %v42_v11 = vld [vmem:[#allocation2 + $0x20] sm:$0xff]  ;;  %v43_v12 = vld [vmem:[#allocation2 + $0x28] sm:$0xff]  ;;  %418 = vmatprep.mubr.msk.f32.mxu0 %vm630_vm2, %v631_v13  ;;  %v56_v16 = vld [vmem:[#allocation2 + $0x90] sm:$0xff]  ;;  %v32_v55 = vand.u32 127, %v31_v54  ;;  %s633_s0 = smov [#allocation5]  }
  0x16   :  { %vm29_vm1 = vcmp.lt.s32.totalorder %v28_v8, 49  ;;  %v54_v14 = vld [vmem:[#allocation2 + $0x80] sm:$0xff]  ;;  %v55_v15 = vld [vmem:[#allocation2 + $0x88] sm:$0xff]  ;;  %453 = vmatprep.mubr.msk.f32.mxu1 %vm630_vm2, %v631_v13  ;;  %v498_v17 = vpack.c.bf16 %v43_v12, %v42_v11  ;;  %v57_v19 = vld [vmem:[#allocation2 + $0x98] sm:$0xff]  ;;  %v632_v57 = vmov 1.0   ;;  %s323_s1 = sshll.u32 %s633_s0, 4  ;;  %s324_s1 = int_to_ptr.vmem [resolvable:$true] %s323_s1 }
  0x17   :  { %493 = vmatpush3.bf16.msra.mxu0 %v492_v5  ;;  %v30_v10 = vsel %vm29_vm1, %v28_v8, 49  ;;  %v516_v18 = vpack.c.bf16 %v55_v15, %v54_v14  ;;  %v44_v20 = vld [vmem:[#allocation2 + $0x30] sm:$0xff]  ;;  %v45_v21 = vld [vmem:[#allocation2 + $0x38] sm:$0xff]  ;;  %v519_v22 = vpack.c.bf16 %v57_v19, %v56_v16  ;;  %v58_v23 = vld [vmem:[#allocation2 + $0xa0] sm:$0xff]  ;;  %s599_s25 = scalar_lea.vmem %s324_s1, 128  ;;  %p604_p9 = scmp.lt.s32.totalorder %s324_s1, %s324_s1 }
  0x18   :  { %494 = vmatprep.subr.bf16.mxu0 %v629_v1  ;;  %34 = vperm.xlu0 %572, %v30_v10   ;;  %v59_v24 = vld [vmem:[#allocation2 + $0xa8] sm:$0xff]  ;;  %v501_v25 = vpack.c.bf16 %v45_v21, %v44_v20  ;;  %v46_v26 = vld [vmem:[#allocation2 + $0x40] sm:$0xff]  ;;  %v60_v29 = vld [vmem:[#allocation2 + $0xb0] sm:$0xff]  ;;  %p600_p8 = scmp.ne.s32.totalorder %s324_s1, %s599_s25  ;;  %p605_p10 = scmp.lt.s32.totalorder %s599_s25, %s599_s25 }
  0x19   :  { %517 = vmatpush3.bf16.msra.mxu1 %v516_v18  ;;  %v47_v27 = vld [vmem:[#allocation2 + $0x48] sm:$0xff]  ;;  %v522_v28 = vpack.c.bf16 %v59_v24, %v58_v23  ;;  %v61_v30 = vld [vmem:[#allocation2 + $0xb8] sm:$0xff]  ;;  %v48_v32 = vld [vmem:[#allocation2 + $0x50] sm:$0xff] }
  0x1a   :  { %518 = vmatprep.subr.bf16.mxu1 %v629_v1  ;;  %v504_v31 = vpack.c.bf16 %v47_v27, %v46_v26  ;;  %v49_v33 = vld [vmem:[#allocation2 + $0x58] sm:$0xff]  ;;  %v525_v34 = vpack.c.bf16 %v61_v30, %v60_v29  ;;  %v62_v35 = vld [vmem:[#allocation2 + $0xc0] sm:$0xff]  ;;  %v63_v36 = vld [vmem:[#allocation2 + $0xc8] sm:$0xff]  ;;  %p606_p11 = por %p605_p10, %p604_p9 }
  0x1b   :  { %496 = vmatpush3.bf16.msra.mxu0 %v495_v9  ;;  %v507_v37 = vpack.c.bf16 %v49_v33, %v48_v32  ;;  %v50_v38 = vld [vmem:[#allocation2 + $0x60] sm:$0xff]  ;;  %v51_v39 = vld [vmem:[#allocation2 + $0x68] sm:$0xff]  ;;  %v528_v40 = vpack.c.bf16 %v63_v36, %v62_v35  ;;  %v64_v41 = vld [vmem:[#allocation2 + $0xd0] sm:$0xff] }
  0x1c   :  { %497 = vmatprep.subr.bf16.mxu0 %v629_v1  ;;  %v65_v42 = vld [vmem:[#allocation2 + $0xd8] sm:$0xff]  ;;  %v510_v43 = vpack.c.bf16 %v51_v39, %v50_v38  ;;  %v52_v44 = vld [vmem:[#allocation2 + $0x70] sm:$0xff]  ;;  %v66_v47 = vld [vmem:[#allocation2 + $0xe0] sm:$0xff]  ;;  %p607_p12 = pnand %p606_p11, %p600_p8 }
  0x1d   :  { %520 = vmatpush3.bf16.msra.mxu1 %v519_v22  ;;  %v53_v45 = vld [vmem:[#allocation2 + $0x78] sm:$0xff]  ;;  %v531_v46 = vpack.c.bf16 %v65_v42, %v64_v41  ;;  %v67_v48 = vld [vmem:[#allocation2 + $0xe8] sm:$0xff]  ;;  %v68_v51 = vld [vmem:[#allocation2 + $0xf0] sm:$0xff] }
  0x1e   :  { %521 = vmatprep.subr.bf16.mxu1 %v629_v1  ;;  %v513_v49 = vpack.c.bf16 %v53_v45, %v52_v44  ;;  %v534_v50 = vpack.c.bf16 %v67_v48, %v66_v47  ;;  %v69_v52 = vld [vmem:[#allocation2 + $0xf8] sm:$0xff]  ;;  %v70_v58 = vld [vmem:[#allocation2 + $0x100] sm:$0xff]  ;;  %v71_v59 = vld [vmem:[#allocation2 + $0x108] sm:$0xff] }
  0x1f   :  { %499 = vmatpush3.bf16.msra.mxu0 %v498_v17  ;;  %v537_v53 = vpack.c.bf16 %v69_v52, %v68_v51  ;;  %v72_v60 = vld [vmem:[#allocation2 + $0x110] sm:$0xff]  ;;  %v540_v61 = vpack.c.bf16 %v71_v59, %v70_v58  ;;  %v73_v62 = vld [vmem:[#allocation2 + $0x118] sm:$0xff]  ;;  %v74_v0 = vld [vmem:[#allocation2 + $0x120] sm:$0xff] }
  0x20   :  { %500 = vmatprep.subr.bf16.mxu0 %v629_v1  ;;  %v543_v63 = vpack.c.bf16 %v73_v62, %v72_v60  ;;  %v75_v2 = vld [vmem:[#allocation2 + $0x128] sm:$0xff]  ;;  %v76_v6 = vld [vmem:[#allocation2 + $0x130] sm:$0xff]  ;;  %v77_v7 = vld [vmem:[#allocation2 + $0x138] sm:$0xff] }
  0x21   :  { %523 = vmatpush3.bf16.msra.mxu1 %v522_v28  ;;  %v546_v3 = vpack.c.bf16 %v75_v2, %v74_v0  ;;  %v549_v8 = vpack.c.bf16 %v77_v7, %v76_v6  ;;  %v78_v9 = vld [vmem:[#allocation2 + $0x140] sm:$0xff]  ;;  %v79_v10 = vld [vmem:[#allocation2 + $0x148] sm:$0xff]  ;;  %v80_v12 = vld [vmem:[#allocation2 + $0x150] sm:$0xff] }
  0x22   :  { %524 = vmatprep.subr.bf16.mxu1 %v629_v1  ;;  %v552_v11 = vpack.c.bf16 %v79_v10, %v78_v9  ;;  %v82_v15 = vld [vmem:[#allocation2 + $0x160] sm:$0xff]  ;;  %v83_v16 = vld [vmem:[#allocation2 + $0x168] sm:$0xff]  ;;  %v84_v18 = vld [vmem:[#allocation2 + $0x170] sm:$0xff] }
  0x23   :  { %502 = vmatpush3.bf16.msra.mxu0 %v501_v25  ;;  %v558_v17 = vpack.c.bf16 %v83_v16, %v82_v15  ;;  %v85_v19 = vld [vmem:[#allocation2 + $0x178] sm:$0xff]  ;;  %v333_v21 = vld [vmem:[#allocation2 + $0x180] ss:$0 sm:$0xff]  ;;  %v334_v30 = vld [vmem:[#allocation2 + $0x188] ss:$0 sm:$0xff] }
  0x24   :  { %503 = vmatprep.subr.bf16.mxu0 %v629_v1  ;;  %v561_v20 = vpack.c.bf16 %v85_v19, %v84_v18 }
  0x25   :  { %526 = vmatpush3.bf16.msra.mxu1 %v525_v34 }
  0x26   :  { %527 = vmatprep.subr.bf16.mxu1 %v629_v1 }
  0x27   :  { %505 = vmatpush3.bf16.msra.mxu0 %v504_v31 }
  0x28   :  { %506 = vmatprep.subr.bf16.mxu0 %v629_v1 }
  0x29   :  { %529 = vmatpush3.bf16.msra.mxu1 %v528_v40 }
  0x2a   :  { %530 = vmatprep.subr.bf16.mxu1 %v629_v1 }
  0x2b   :  { %508 = vmatpush3.bf16.msra.mxu0 %v507_v37 }
  0x2c   :  { %509 = vmatprep.subr.bf16.mxu0 %v629_v1 }
  0x2d   :  { %532 = vmatpush3.bf16.msra.mxu1 %v531_v46 }
  0x2e   :  { %533 = vmatprep.subr.bf16.mxu1 %v629_v1 }
  0x2f   :  { %511 = vmatpush3.bf16.msra.mxu0 %v510_v43 }
  0x30   :  { %512 = vmatprep.subr.bf16.mxu0 %v629_v1 }
  0x31   :  { %535 = vmatpush3.bf16.msra.mxu1 %v534_v50 }
  0x32   :  { %536 = vmatprep.subr.bf16.mxu1 %v629_v1 }
  0x33   :  { %514 = vmatpush3.bf16.msra.mxu0 %v513_v49 }
  0x34   :  { %539 = vmatprep.subr.bf16.mxu0 %v629_v1 }
  0x35   :  { %538 = vmatpush3.bf16.msra.mxu1 %v537_v53 }
  0x97   :  { %v35_v56 = vpop.permute.xlu0 %34 }
  0x98   :  { %vm36_vm3 = vcmp.eq.s32.totalorder %v32_v55, %v35_v56 }
  0x99   :  { %419 = vmatmul.mubr.msk.f32.vlgmr.msra.gmra.mrb[0].mxu0 %vm36_vm3, %v632_v57 }
  0x9a   :  { %488 = vmatprep.mubr.msk.f32.mxu0 %vm630_vm2, %v631_v13  ;;  %541 = vmatpush3.bf16.msra.mxu0 %v540_v61  ;;  %v81_v13 = vld [vmem:[#allocation2 + $0x158] sm:$0xff] }
  0x9b   :  { %542 = vmatprep.subr.bf16.mxu0 %v629_v1  ;;  %v555_v14 = vpack.c.bf16 %v81_v13, %v80_v12 }
  0x9e   :  { %544 = vmatpush3.bf16.msra.mxu0 %v543_v63 }
  0x9f   :  { %545 = vmatprep.subr.bf16.mxu0 %v629_v1 }
  0xa2   :  { %547 = vmatpush3.bf16.msra.mxu0 %v546_v3 }
  0xa3   :  { %548 = vmatprep.subr.bf16.mxu0 %v629_v1 }
  0xa6   :  { %550 = vmatpush3.bf16.msra.mxu0 %v549_v8 }
  0xa7   :  { %551 = vmatprep.subr.bf16.mxu0 %v629_v1 }
  0xaa   :  { %553 = vmatpush3.bf16.msra.mxu0 %v552_v11 }
  0xab   :  { %554 = vmatprep.subr.bf16.mxu0 %v629_v1 }
  0xae   :  { %556 = vmatpush3.bf16.msra.mxu0 %v555_v14 }
  0xaf   :  { %557 = vmatprep.subr.bf16.mxu0 %v629_v1 }
  0xb2   :  { %559 = vmatpush3.bf16.msra.mxu0 %v558_v17 }
  0xb3   :  { %560 = vmatprep.subr.bf16.mxu0 %v629_v1 }
  0xb6   :  { %562 = vmatpush3.bf16.msra.mxu0 %v561_v20 }
 0x16c   :  { %v154_v4 = vpop.f32.mrb[0].mxu0 }
 0x16d   :  { %v420_v5 = vpop.f32.mrb[1].mxu0  ;;  %454 = vmatmul.mubr.f32.vlgmr.msra.gmra.mrb[0].mxu1 %v154_v4 }
 0x240   :  { %v228_v22 = vpop.f32.mrb[0].mxu1 }
 0x241   :  { %v229_v23 = vadd.f32 %v333_v21, %v228_v22  ;;  %v455_v24 = vpop.f32.mrb[1].mxu1 }
 0x243   :  { %v232_v25 = vmul.f32 0.5, %v229_v23 }
 0x245   :  { %573 = vtanh.f32 %v232_v25 }
 0x24f   :  { %v574_v26 = vpop.eup %573 }
 0x250   :  { %v234_v27 = vadd.f32 1.0, %v574_v26 }
 0x252   :  { %v235_v28 = vmul.f32 0.5, %v234_v27 }
 0x254   :  { %v236_v29 = vmul.f32 %v235_v28, %v229_v23 }
 0x256   :  { %489 = vmatmul.mubr.f32.vlgmr.msra.gmra.mrb[2].mxu0 %v236_v29 }
 0x329   :  { %v307_v31 = vpop.f32.mrb[2].mxu0 }
 0x32a   :  { %v308_v32 = vadd.f32 %v334_v30, %v307_v31  ;;  %v490_v33 = vpop.f32.mrb[3].mxu0 }
 0x32c   :  { %v311_v1 = vmul.f32 0.5, %v308_v32 }
 0x32e   :  { %575 = vtanh.f32 %v311_v1 }
 0x338   :  { %v576_v34 = vpop.eup %575 }
 0x339   :  { %v313_v35 = vadd.f32 1.0, %v576_v34 }
 0x33b   :  { %v314_v36 = vmul.f32 0.5, %v313_v35 }
 0x33d   :  { %v315_v37 = vmul.f32 %v314_v36, %v308_v32 }
 0x33f   :  { %316 = vst [vmem:[#allocation5] sm:$0xff] %v315_v37 }
 0x340   :  { %610 = shalt.err (!%p607_p12)
}
 0x341   :  { %s611_s28 = scalar_lea.hbm %s708_s2, 128 }
 0x342   :  { %p612_p13 = scmp.ne.s32.totalorder %s708_s2, %s611_s28  ;;  %p615_p0 = scmp.lt.u32.totalorder %s611_s28, %s708_s2 }
 0x344   :  { %p617_p1 = pnand %p615_p0, %p612_p13 }
 0x346   :  { %620 = shalt.err (!%p617_p1)
}
 0x347   :  { %326 = dma.vmem_to_hbm [thread:$0]  %s324_s1, 128, %s708_s2, [#allocation4]  }
 0x348   :  { %623 = dma.done.wait [#allocation4], 128  }
 0x349   :  { %624 = vsyncadd [#allocation4], 4294967168 }
 0x34a   :  { %330 = vsyncpa [#allocation3], 1 }
 0x34b   :  { %331 = vsyncpa [#allocation4], 1 }

</bundles_post_ra>
